<compile_context>
chip_gen: v6e
topology: v6e:2x2x1
jax: 0.10.0
libtpu: 0.0.40
codegen_flags: <defaults>
</compile_context>

<pallas_src>
import functools

import jax
import jax.numpy as jnp
from jax.experimental import pallas as pl
from jax.experimental.pallas import tpu as pltpu


def tower_kernel(x_ref, w1_ref, b1_ref, w2_ref, b2_ref, o_ref):
    # fc1: [TB, Inp] @ [Inp, Hp]  (f32 accumulate on the MXU)
    h = jnp.dot(x_ref[...], w1_ref[...], preferred_element_type=jnp.float32)
    # bias + ReLU in f32 (bias broadcast read once per grid step).
    h = jnp.maximum(h + b1_ref[...], 0.0)
    # Dropout(p=0.4): identity in eval mode.
    # TODO(synk): training-mode dropout would use pltpu.prng_seed + prng_random_bits.
    # fc2: [TB, Hp] @ [Hp, Op]  (feed MXU at the weight dtype; f32 accumulate)
    out = jnp.dot(h.astype(w2_ref.dtype), w2_ref[...],
                  preferred_element_type=jnp.float32)
    # bias + sigmoid in f32, lane-dense store (Op is a multiple of 128).
    o_ref[...] = jax.nn.sigmoid(out + b2_ref[...])


def _round_up(n, m):
    return ((n + m - 1) // m) * m


@functools.partial(jax.jit, static_argnames=("block_b", "compute_dtype"))
def tower_forward(x, w1, b1, w2, b2, *, block_b=512, compute_dtype=None):
    """x: [B, In]; w1: [In, H]; b1: [1, H]; w2: [H, Out]; b2: [1, Out].

    compute_dtype: dtype fed to the MXU for x/W1/W2 (e.g. jnp.bfloat16 on
    v6e/v7x). Accumulation, bias-add, ReLU and sigmoid always stay in f32.
    """
    B, In = x.shape
    H = w1.shape[1]
    Out = w2.shape[1]

    LANE = 128   # lane width: keep last dims lane-dense
    SUB = 8      # sublane granularity for the batch tile

    Inp = _round_up(In, LANE)
    Hp = _round_up(H, LANE)
    Op = _round_up(Out, LANE)
    TB = min(block_b, _round_up(B, SUB))   # batch tile (rows per grid step)
    Bp = _round_up(B, TB)

    in_dtype = x.dtype if compute_dtype is None else compute_dtype

    # Zero-padding keeps the math exact:
    #  - padded input columns multiply zero rows of W1,
    #  - padded hidden columns give relu(0+0)=0 and multiply zero rows of W2,
    #  - padded output columns are sliced off below.
    xp = jnp.pad(x, ((0, Bp - B), (0, Inp - In))).astype(in_dtype)
    w1p = jnp.pad(w1, ((0, Inp - In), (0, Hp - H))).astype(in_dtype)
    b1p = jnp.pad(b1, ((0, 0), (0, Hp - H))).astype(jnp.float32)
    w2p = jnp.pad(w2, ((0, Hp - H), (0, Op - Out))).astype(in_dtype)
    b2p = jnp.pad(b2, ((0, 0), (0, Op - Out))).astype(jnp.float32)

    out_padded = pl.pallas_call(
        tower_kernel,
        out_shape=jax.ShapeDtypeStruct((Bp, Op), jnp.float32),
        grid_spec=pltpu.PrefetchScalarGridSpec(
            num_scalar_prefetch=0,
            grid=(Bp // TB,),
            in_specs=[
                # x: tiled along batch, double-buffered by the BlockSpec pipeline.
                pl.BlockSpec((TB, Inp), lambda i: (i, 0)),
                # weights/biases: constant block index -> VMEM-resident, no re-DMA.
                pl.BlockSpec((Inp, Hp), lambda i: (0, 0)),
                pl.BlockSpec((1, Hp), lambda i: (0, 0)),
                pl.BlockSpec((Hp, Op), lambda i: (0, 0)),
                pl.BlockSpec((1, Op), lambda i: (0, 0)),
            ],
            out_specs=pl.BlockSpec((TB, Op), lambda i: (i, 0)),
        ),
        compiler_params=pltpu.CompilerParams(
            # Batch tiles are independent -> shard across TCs on v7x, free on v5e/v6e.
            dimension_semantics=("parallel",),
        ),
    )(xp, w1p, b1p, w2p, b2p)

    return out_padded[:B, :Out]


def xavier_uniform(key, fan_in, fan_out):
    # Matches torch.nn.init.xavier_uniform_ on a [fan_out, fan_in] weight.
    limit = jnp.sqrt(6.0 / (fan_in + fan_out))
    # Sample in [out, in] layout (PyTorch convention) then transpose for the kernel.
    w = jax.random.uniform(key, (fan_out, fan_in), jnp.float32, -limit, limit)
    return w.T  # [in, out]


if __name__ == "__main__":
    batch = 8
    input_size = 32
    hidden_size = 64
    output_size = 16

    key = jax.random.PRNGKey(0)
    kx, k1, k2, kb1, kb2 = jax.random.split(key, 5)

    x = jax.random.normal(kx, (batch, input_size), jnp.float32)

    w1 = xavier_uniform(k1, input_size, hidden_size)   # [In, H]
    w2 = xavier_uniform(k2, hidden_size, output_size)  # [H, Out]
    # nn.Linear biases: uniform(-1/sqrt(fan_in), 1/sqrt(fan_in)), kept 2-D for TPU.
    bnd1 = 1.0 / jnp.sqrt(jnp.float32(input_size))
    bnd2 = 1.0 / jnp.sqrt(jnp.float32(hidden_size))
    b1 = jax.random.uniform(kb1, (1, hidden_size), jnp.float32, -bnd1, bnd1)
    b2 = jax.random.uniform(kb2, (1, output_size), jnp.float32, -bnd2, bnd2)

    # Pure-JAX reference of the same forward (eval-mode dropout = identity).
    ref = jax.nn.sigmoid(jnp.maximum(x @ w1 + b1, 0.0) @ w2 + b2)

    # f32 path: tight tolerance.
    out = tower_forward(x, w1, b1, w2, b2)
    out = jax.block_until_ready(out)
    assert out.shape == (batch, output_size)
    assert jnp.allclose(out, ref, atol=1e-5, rtol=1e-5)

    # bf16 MXU path (v6e/v7x recommendation): looser tolerance, f32 elementwise.
    out_bf16 = tower_forward(x, w1, b1, w2, b2, compute_dtype=jnp.bfloat16)
    out_bf16 = jax.block_until_ready(out_bf16)
    assert out_bf16.shape == (batch, output_size)
    assert jnp.allclose(out_bf16, ref, atol=2e-2, rtol=2e-2)

    print("KERNEL_OK")
</pallas_src>

<mosaic_0001>
module attributes {stable_mosaic.version = 11 : i64} {
  func.func @tower_kernel(%arg0: i32, %arg1: memref<8x128xf32, #tpu.memory_space<vmem>>, %arg2: memref<128x128xf32, #tpu.memory_space<vmem>>, %arg3: memref<1x128xf32, #tpu.memory_space<vmem>>, %arg4: memref<128x128xf32, #tpu.memory_space<vmem>>, %arg5: memref<1x128xf32, #tpu.memory_space<vmem>>, %arg6: memref<8x128xf32, #tpu.memory_space<vmem>>) attributes {dimension_semantics = [#tpu.dimension_semantics<parallel>], iteration_bounds = array<i64: 1>, scalar_prefetch = 0 : i64, scratch_operands = 0 : i64, tpu.core_type = #tpu.core_type<tc>, window_params = [{transform_indices = @transform_0, window_bounds = array<i64: 8, 128>}, {pipeline_mode = #tpu.pipeline_mode<synchronous>, transform_indices = @transform_1, window_bounds = array<i64: 128, 128>}, {pipeline_mode = #tpu.pipeline_mode<synchronous>, transform_indices = @transform_2, window_bounds = array<i64: 1, 128>}, {pipeline_mode = #tpu.pipeline_mode<synchronous>, transform_indices = @transform_3, window_bounds = array<i64: 128, 128>}, {pipeline_mode = #tpu.pipeline_mode<synchronous>, transform_indices = @transform_4, window_bounds = array<i64: 1, 128>}, {transform_indices = @transform_5, window_bounds = array<i64: 8, 128>}]} {
    %c0 = arith.constant 0 : index
    %c0_0 = arith.constant 0 : index
    %0 = vector.load %arg1[%c0, %c0_0] : memref<8x128xf32, #tpu.memory_space<vmem>>, vector<8x128xf32>
    %c0_1 = arith.constant 0 : index
    %c0_2 = arith.constant 0 : index
    %1 = vector.load %arg2[%c0_1, %c0_2] : memref<128x128xf32, #tpu.memory_space<vmem>>, vector<128x128xf32>
    %cst = arith.constant dense<0.000000e+00> : vector<8x128xf32>
    %2 = tpu.matmul %0, %1, %cst {dimension_numbers = #tpu.dot_dimension_numbers<[1], [0], [0], [1], [0, 0, 1, 1], [], []>} : vector<8x128xf32>, vector<128x128xf32>, vector<8x128xf32> -> vector<8x128xf32>
    %c0_3 = arith.constant 0 : index
    %c0_4 = arith.constant 0 : index
    %3 = vector.load %arg3[%c0_3, %c0_4] : memref<1x128xf32, #tpu.memory_space<vmem>>, vector<1x128xf32>
    %4 = vector.broadcast %3 : vector<1x128xf32> to vector<8x128xf32>
    %5 = arith.addf %2, %4 : vector<8x128xf32>
    %cst_5 = arith.constant 0.000000e+00 : f32
    %6 = vector.broadcast %cst_5 : f32 to vector<8x128xf32>
    %7 = arith.maximumf %5, %6 : vector<8x128xf32>
    %c0_6 = arith.constant 0 : index
    %c0_7 = arith.constant 0 : index
    %8 = vector.load %arg4[%c0_6, %c0_7] : memref<128x128xf32, #tpu.memory_space<vmem>>, vector<128x128xf32>
    %cst_8 = arith.constant dense<0.000000e+00> : vector<8x128xf32>
    %9 = tpu.matmul %7, %8, %cst_8 {dimension_numbers = #tpu.dot_dimension_numbers<[1], [0], [0], [1], [0, 0, 1, 1], [], []>} : vector<8x128xf32>, vector<128x128xf32>, vector<8x128xf32> -> vector<8x128xf32>
    %c0_9 = arith.constant 0 : index
    %c0_10 = arith.constant 0 : index
    %10 = vector.load %arg5[%c0_9, %c0_10] : memref<1x128xf32, #tpu.memory_space<vmem>>, vector<1x128xf32>
    %11 = vector.broadcast %10 : vector<1x128xf32> to vector<8x128xf32>
    %12 = arith.addf %9, %11 : vector<8x128xf32>
    %13 = arith.negf %12 : vector<8x128xf32>
    %14 = math.exp %13 : vector<8x128xf32>
    %cst_11 = arith.constant 1.000000e+00 : f32
    %15 = vector.broadcast %cst_11 : f32 to vector<8x128xf32>
    %16 = arith.addf %15, %14 : vector<8x128xf32>
    %17 = arith.divf %15, %16 : vector<8x128xf32>
    %c0_12 = arith.constant 0 : index
    %c0_13 = arith.constant 0 : index
    %18 = vector.load %arg6[%c0_12, %c0_13] : memref<8x128xf32, #tpu.memory_space<vmem>>, vector<8x128xf32>
    tpu.vector_store %arg6[%c0_12, %c0_13], %17 {strides = array<i32>} : memref<8x128xf32, #tpu.memory_space<vmem>>, vector<8x128xf32>,
    return
  }
  func.func @transform_0(%arg0: i32) -> (i32, i32) {
    %c0_i32 = arith.constant 0 : i32
    %c0_i32_0 = arith.constant 0 : i32
    return %arg0, %c0_i32 : i32, i32
  }
  func.func @transform_1(%arg0: i32) -> (i32, i32) {
    %c0_i32 = arith.constant 0 : i32
    %c0_i32_0 = arith.constant 0 : i32
    %c0_i32_1 = arith.constant 0 : i32
    return %c0_i32, %c0_i32_0 : i32, i32
  }
  func.func @transform_2(%arg0: i32) -> (i32, i32) {
    %c0_i32 = arith.constant 0 : i32
    %c0_i32_0 = arith.constant 0 : i32
    %c0_i32_1 = arith.constant 0 : i32
    return %c0_i32, %c0_i32_0 : i32, i32
  }
  func.func @transform_3(%arg0: i32) -> (i32, i32) {
    %c0_i32 = arith.constant 0 : i32
    %c0_i32_0 = arith.constant 0 : i32
    %c0_i32_1 = arith.constant 0 : i32
    return %c0_i32, %c0_i32_0 : i32, i32
  }
  func.func @transform_4(%arg0: i32) -> (i32, i32) {
    %c0_i32 = arith.constant 0 : i32
    %c0_i32_0 = arith.constant 0 : i32
    %c0_i32_1 = arith.constant 0 : i32
    return %c0_i32, %c0_i32_0 : i32, i32
  }
  func.func @transform_5(%arg0: i32) -> (i32, i32) {
    %c0_i32 = arith.constant 0 : i32
    %c0_i32_0 = arith.constant 0 : i32
    return %arg0, %c0_i32 : i32, i32
  }
}

</mosaic_0001>

<bundles_post_ra>
// kernel: tower_forward.1
= control target key start
LH: loop header
LB: loop body
LE: loop exit
PB: predicated region body
PF: predicated region fallthrough
CT: control target
= control target key end

     0   :  { %v366_v1 = vmov 0.0   ;;  %vm367_vm0 = vmmov 0   ;;  %s541_s0 = inlined_call_operand.vmem [shape: f32[8,128], index: 0, kind: input, shape index: {}]   ;;  %s542_s1 = inlined_call_operand.vmem [shape: f32[128,128], index: 1, kind: input, shape index: {}]   ;;  %s543_s2 = inlined_call_operand.vmem [shape: f32[1,128], index: 2, kind: input, shape index: {}]   ;;  %s544_s3 = inlined_call_operand.vmem [shape: f32[128,128], index: 3, kind: input, shape index: {}]   ;;  %s545_s4 = inlined_call_operand.vmem [shape: f32[1,128], index: 4, kind: input, shape index: {}]   ;;  %s546_s5 = inlined_call_operand.hbm [shape: f32[8,128], index: 5, kind: output, shape index: {}]  }
   0x1   :  { %v37_v0 = vld [vmem:[%s542_s1 + $0x78] sm:$0xff]  ;;  %267 = vmatprep.subr.mxu0 %v366_v1  ;;  %v36_v2 = vld [vmem:[%s542_s1 + $0x70] sm:$0xff]  ;;  %299 = vmatprep.mubr.msk.f32.mxu0 %vm367_vm0, %v366_v1  ;;  %v35_v3 = vld [vmem:[%s542_s1 + $0x68] sm:$0xff] }
   0x2   :  { %268 = vmatpush3.msra.mxu0 %v37_v0  ;;  %302 = vmatprep.subr.mxu1 %v366_v1  ;;  %v34_v4 = vld [vmem:[%s542_s1 + $0x60] sm:$0xff]  ;;  %v131_v5 = vld [vmem:[%s544_s3 + $0x78] sm:$0xff]  ;;  %v130_v6 = vld [vmem:[%s544_s3 + $0x70] sm:$0xff] }
   0x3   :  { %269 = vmatprep.subr.mxu0 %v366_v1  ;;  %334 = vmatprep.mubr.msk.f32.mxu1 %vm367_vm0, %v366_v1  ;;  %v33_v7 = vld [vmem:[%s542_s1 + $0x58] sm:$0xff]  ;;  %v129_v8 = vld [vmem:[%s544_s3 + $0x68] sm:$0xff]  ;;  %v32_v9 = vld [vmem:[%s542_s1 + $0x50] sm:$0xff] }
   0x4   :  { %270 = vmatpush3.msra.mxu0 %v36_v2  ;;  %303 = vmatpush3.msra.mxu1 %v131_v5  ;;  %v128_v10 = vld [vmem:[%s544_s3 + $0x60] sm:$0xff] }
   0x5   :  { %271 = vmatprep.subr.mxu0 %v366_v1  ;;  %304 = vmatprep.subr.mxu1 %v366_v1 }
   0x6   :  { %272 = vmatpush3.msra.mxu0 %v35_v3  ;;  %305 = vmatpush3.msra.mxu1 %v130_v6 }
   0x7   :  { %273 = vmatprep.subr.mxu0 %v366_v1  ;;  %306 = vmatprep.subr.mxu1 %v366_v1 }
   0x8   :  { %274 = vmatpush3.msra.mxu0 %v34_v4  ;;  %307 = vmatpush3.msra.mxu1 %v129_v8 }
   0x9   :  { %275 = vmatprep.subr.mxu0 %v366_v1 }
   0xa   :  { %276 = vmatpush3.msra.mxu0 %v33_v7 }
   0xb   :  { %10 = vsyncpa [#allocation3], 0  ;;  %277 = vmatprep.subr.mxu0 %v366_v1  ;;  %v31_v11 = vld [vmem:[%s542_s1 + $0x48] sm:$0xff]  ;;  %308 = vmatprep.subr.mxu1 %v366_v1  ;;  %v127_v12 = vld [vmem:[%s544_s3 + $0x58] sm:$0xff] }
   0xc   :  { %278 = vmatpush3.msra.mxu0 %v32_v9  ;;  %309 = vmatpush3.msra.mxu1 %v128_v10  ;;  %v30_v13 = vld [vmem:[%s542_s1 + $0x40] sm:$0xff]  ;;  %v126_v14 = vld [vmem:[%s544_s3 + $0x50] sm:$0xff]  ;;  %v29_v15 = vld [vmem:[%s542_s1 + $0x38] sm:$0xff] }
   0xd   :  { %279 = vmatprep.subr.mxu0 %v366_v1  ;;  %310 = vmatprep.subr.mxu1 %v366_v1  ;;  %v125_v16 = vld [vmem:[%s544_s3 + $0x48] sm:$0xff]  ;;  %v28_v17 = vld [vmem:[%s542_s1 + $0x30] sm:$0xff]  ;;  %v124_v18 = vld [vmem:[%s544_s3 + $0x40] sm:$0xff] }
   0xe   :  { %280 = vmatpush3.msra.mxu0 %v31_v11  ;;  %311 = vmatpush3.msra.mxu1 %v127_v12  ;;  %v27_v19 = vld [vmem:[%s542_s1 + $0x28] sm:$0xff]  ;;  %v123_v20 = vld [vmem:[%s544_s3 + $0x38] sm:$0xff]  ;;  %v26_v21 = vld [vmem:[%s542_s1 + $0x20] sm:$0xff] }
   0xf   :  { %281 = vmatprep.subr.mxu0 %v366_v1  ;;  %312 = vmatprep.subr.mxu1 %v366_v1  ;;  %v122_v22 = vld [vmem:[%s544_s3 + $0x30] sm:$0xff]  ;;  %v25_v23 = vld [vmem:[%s542_s1 + $0x18] sm:$0xff]  ;;  %v121_v24 = vld [vmem:[%s544_s3 + $0x28] sm:$0xff] }
  0x10   :  { %282 = vmatpush3.msra.mxu0 %v30_v13  ;;  %313 = vmatpush3.msra.mxu1 %v126_v14  ;;  %v24_v25 = vld [vmem:[%s542_s1 + $0x10] sm:$0xff]  ;;  %v120_v26 = vld [vmem:[%s544_s3 + $0x20] sm:$0xff]  ;;  %v23_v27 = vld [vmem:[%s542_s1 + $0x8] sm:$0xff] }
  0x11   :  { %283 = vmatprep.subr.mxu0 %v366_v1  ;;  %314 = vmatprep.subr.mxu1 %v366_v1  ;;  %v119_v28 = vld [vmem:[%s544_s3 + $0x18] sm:$0xff]  ;;  %v22_v29 = vld [vmem:[%s542_s1] sm:$0xff]  ;;  %v118_v31 = vld [vmem:[%s544_s3 + $0x10] sm:$0xff] }
  0x12   :  { %284 = vmatpush3.msra.mxu0 %v29_v15  ;;  %315 = vmatpush3.msra.mxu1 %v125_v16  ;;  %v21_v30 = vld [vmem:[%s541_s0] sm:$0xff]  ;;  %v117_v32 = vld [vmem:[%s544_s3 + $0x8] sm:$0xff] }
  0x13   :  { %285 = vmatprep.subr.mxu0 %v366_v1  ;;  %316 = vmatprep.subr.mxu1 %v366_v1  ;;  %v116_v33 = vld [vmem:[%s544_s3] sm:$0xff]  ;;  %s368_s3 = smov [#allocation2]  }
  0x14   :  { %286 = vmatpush3.msra.mxu0 %v28_v17  ;;  %317 = vmatpush3.msra.mxu1 %v124_v18  ;;  %v230_v34 = vld [vmem:[%s543_s2] ss:$0 sm:$0xff]  ;;  %s222_s11 = sshll.u32 %s368_s3, 4  ;;  %s223_s11 = int_to_ptr.vmem [resolvable:$true] %s222_s11 }
  0x15   :  { %287 = vmatprep.subr.mxu0 %v366_v1  ;;  %318 = vmatprep.subr.mxu1 %v366_v1  ;;  %v231_v39 = vld [vmem:[%s545_s4] ss:$0 sm:$0xff]  ;;  %s344_s2 = scalar_lea.vmem %s223_s11, 128  ;;  %p349_p1 = scmp.lt.s32.totalorder %s223_s11, %s223_s11 }
  0x16   :  { %288 = vmatpush3.msra.mxu0 %v27_v19  ;;  %319 = vmatpush3.msra.mxu1 %v123_v20  ;;  %p345_p0 = scmp.ne.s32.totalorder %s223_s11, %s344_s2  ;;  %p350_p2 = scmp.lt.s32.totalorder %s344_s2, %s344_s2 }
  0x17   :  { %289 = vmatprep.subr.mxu0 %v366_v1  ;;  %320 = vmatprep.subr.mxu1 %v366_v1 }
  0x18   :  { %290 = vmatpush3.msra.mxu0 %v26_v21  ;;  %321 = vmatpush3.msra.mxu1 %v122_v22  ;;  %p351_p3 = por %p350_p2, %p349_p1 }
  0x19   :  { %291 = vmatprep.subr.mxu0 %v366_v1  ;;  %322 = vmatprep.subr.mxu1 %v366_v1 }
  0x1a   :  { %292 = vmatpush3.msra.mxu0 %v25_v23  ;;  %323 = vmatpush3.msra.mxu1 %v121_v24  ;;  %p352_p4 = pnand %p351_p3, %p345_p0 }
  0x1b   :  { %293 = vmatprep.subr.mxu0 %v366_v1  ;;  %324 = vmatprep.subr.mxu1 %v366_v1 }
  0x1c   :  { %294 = vmatpush3.msra.mxu0 %v24_v25  ;;  %325 = vmatpush3.msra.mxu1 %v120_v26 }
  0x1d   :  { %295 = vmatprep.subr.mxu0 %v366_v1  ;;  %326 = vmatprep.subr.mxu1 %v366_v1 }
  0x1e   :  { %296 = vmatpush3.msra.mxu0 %v23_v27  ;;  %327 = vmatpush3.msra.mxu1 %v119_v28 }
  0x1f   :  { %297 = vmatprep.subr.mxu0 %v366_v1  ;;  %328 = vmatprep.subr.mxu1 %v366_v1 }
  0x20   :  { %298 = vmatpush3.msra.mxu0 %v22_v29  ;;  %329 = vmatpush3.msra.mxu1 %v118_v31 }
  0x21   :  { %300 = vmatmul.mubr.f32.vlgmr.msra.gmra.mxu0 %v21_v30  ;;  %330 = vmatprep.subr.mxu1 %v366_v1 }
  0x22   :  { %331 = vmatpush3.msra.mxu1 %v117_v32 }
  0x23   :  { %332 = vmatprep.subr.mxu1 %v366_v1 }
  0x24   :  { %333 = vmatpush3.msra.mxu1 %v116_v33 }
  0xe1   :  { %v111_v35 = vpop.f32.mrf.mxu0 }
  0xe2   :  { %v112_v36 = vadd.f32 %v230_v34, %v111_v35 }
  0xe3   :  { %v301_v37 = vpop.f32.mrf.mxu0 }
  0xe4   :  { %v115_v38 = vmax.f32 %v112_v36, 0.0 }
  0xe6   :  { %335 = vmatmul.mubr.f32.vlgmr.msra.gmra.mxu1 %v115_v38 }
 0x1a6   :  { %v205_v40 = vpop.f32.mrf.mxu1 }
 0x1a7   :  { %v206_v41 = vadd.f32 %v231_v39, %v205_v40 }
 0x1a8   :  { %v336_v42 = vpop.f32.mrf.mxu1 }
 0x1a9   :  { %v232_v43 = vmul.f32 -1.442695, %v206_v41 }
 0x1ab   :  { %340 = vpow2.f32 %v232_v43 }
 0x1b8   :  { %v341_v44 = vpop.eup %340 }
 0x1b9   :  { %v212_v45 = vadd.f32 1.0, %v341_v44 }
 0x1bb   :  { %342 = vrcp.f32 %v212_v45 }
 0x1c8   :  { %v343_v46 = vpop.eup %342 }
 0x1c9   :  { %215 = vst [vmem:[#allocation2] sm:$0xff] %v343_v46 }
 0x1ca   :  { %355 = shalt.err (!%p352_p4)
}
 0x1cb   :  { %225 = dma.vmem_to_hbm [thread:$0]  %s223_s11, 128, %s546_s5, [#allocation3]  }
 0x1cc   :  { %364 = dma.done.wait [#allocation3], 128  }
 0x1cd   :  { %365 = vsyncadd [#allocation3], 4294967168 }
 0x1ce   :  { %229 = vsyncpa [#allocation3], 1 }

</bundles_post_ra>
